<compile_context>
chip_gen: v5e
topology: v5e:2x2
jax: 0.10.0
libtpu: 0.0.40
codegen_flags: <defaults>
</compile_context>

<pallas_src>
import jax
import jax.numpy as jnp
from jax.experimental import pallas as pl
from jax.experimental.pallas import tpu as pltpu

EPS = 1e-6

# Conservative per-kernel VMEM working-set budget.  Safe under the smallest
# default scoped-VMEM limit across generations (16 MiB on v5e, 32 MiB on
# v6e/v7x).  Sweep this (together with CompilerParams(vmem_limit_bytes=...))
# per chip for peak bandwidth.
VMEM_BUDGET_BYTES = 10 * 1024 * 1024


# ----------------------------- tile sizing ----------------------------------

def _sublane_base(dtype):
    # 8 rows/vreg for f32, 16 for bf16, 32 for int8 (packed sublanes).
    return max(8, 32 // dtype.itemsize)


def _pick_row_tile(rows, per_row_bytes, dtype, *, budget_bytes, cap=1024):
    """Largest row tile that divides `rows`, is sublane-aligned and fits budget."""
    base = _sublane_base(dtype)
    if rows <= base:
        return rows                      # full-extent block is always legal
    best = None
    t = base
    while t <= min(rows, cap):
        if rows % t == 0 and t * per_row_bytes <= budget_bytes:
            best = t
        t += base
    if best is None:
        # TODO(synk): pad/mask ragged row counts; fall back to a legal tile.
        best = base if rows % base == 0 else rows
    return best


def _pick_col_tile(n):
    for t in (256, 128):
        if n % t == 0 and n > t:
            return t
    return n                             # small / non-128-multiple: full axis


# ------------------------------- kernels -------------------------------------

def layernorm_kernel(x_ref, gamma_ref, beta_ref, o_ref):
    """Row-wise LayerNorm (torch semantics: unbiased std, eps added to std)."""
    x = x_ref[...].astype(jnp.float32)                          # (tm, D)
    d = x.shape[-1]
    mean = jnp.mean(x, axis=-1, keepdims=True)
    diff = x - mean
    var_u = jnp.sum(diff * diff, axis=-1, keepdims=True) * (1.0 / (d - 1))
    # approx=True would ride the EUP slot; keep exact for tight numerics here.
    inv = pl.reciprocal(jnp.sqrt(var_u) + EPS, approx=False)
    o_ref[...] = (gamma_ref[...] * diff * inv + beta_ref[...]).astype(o_ref.dtype)


def fused_ln_linear_residual_kernel(x_ref, w_ref, b_ref, gamma_ref, beta_ref,
                                    xres_ref, o_ref, normed_ref):
    """o = x + (LayerNorm(x) @ W + b) for one (tm, tn) output tile.

    LN stats need the full feature dim, so the x tile is (tm, D) (full K).
    The normalized tile is computed once per row block (j == 0) into a
    persistent f32 VMEM scratch and reused for every N tile.
    """
    j = pl.program_id(1)

    @pl.when(j == 0)
    def _():
        x = x_ref[...].astype(jnp.float32)                      # (tm, D)
        d = x.shape[-1]
        mean = jnp.mean(x, axis=-1, keepdims=True)
        diff = x - mean
        var_u = jnp.sum(diff * diff, axis=-1, keepdims=True) * (1.0 / (d - 1))
        inv = pl.reciprocal(jnp.sqrt(var_u) + EPS, approx=False)
        # TODO(synk): gamma/beta could be folded into W/b in the wrapper
        # (W' = diag(gamma) @ W, b' = beta @ W + b) to drop this affine.
        normed_ref[...] = gamma_ref[...] * diff * inv + beta_ref[...]

    acc = jnp.dot(normed_ref[...].astype(w_ref.dtype), w_ref[...],
                  preferred_element_type=jnp.float32)           # MXU
    out = xres_ref[...].astype(jnp.float32) + acc + b_ref[...].astype(jnp.float32)
    # Dropout is the identity in eval mode.
    # TODO(synk): training-mode dropout (random mask + 1/(1-p) scale) omitted.
    o_ref[...] = out.astype(o_ref.dtype)


# ------------------------------- wrappers -------------------------------------

def pallas_layernorm(x2d, gamma, beta, *, row_tile=None,
                     vmem_budget_bytes=VMEM_BUDGET_BYTES):
    rows, d = x2d.shape
    itemsize = x2d.dtype.itemsize
    if row_tile is None:
        per_row = 4 * d * itemsize       # in + out tiles, each double-buffered
        row_tile = _pick_row_tile(rows, per_row, x2d.dtype,
                                  budget_bytes=vmem_budget_bytes)
    assert rows % row_tile == 0, (rows, row_tile)
    return pl.pallas_call(
        layernorm_kernel,
        out_shape=jax.ShapeDtypeStruct((rows, d), x2d.dtype),
        grid_spec=pltpu.PrefetchScalarGridSpec(
            num_scalar_prefetch=0,
            grid=(rows // row_tile,),
            in_specs=[
                pl.BlockSpec((row_tile, d), lambda i: (i, 0)),
                pl.BlockSpec((1, d), lambda i: (0, 0)),
                pl.BlockSpec((1, d), lambda i: (0, 0)),
            ],
            out_specs=pl.BlockSpec((row_tile, d), lambda i: (i, 0)),
        ),
        compiler_params=pltpu.CompilerParams(
            dimension_semantics=("parallel",)),
    )(x2d,
      gamma.reshape(1, d).astype(jnp.float32),
      beta.reshape(1, d).astype(jnp.float32))


def pallas_sublayer_linear(x, w, b, gamma, beta, *, row_tile=None,
                           col_tile=None, vmem_budget_bytes=VMEM_BUDGET_BYTES):
    """Fused SublayerConnection for sublayer = Linear(D, N).

    x: (B, S, D)  ->  x + (LayerNorm(x) @ W + b), in one Pallas kernel.
    """
    B, S, D = x.shape
    N = w.shape[1]
    assert w.shape[0] == D and b.shape == (N,)
    rows = B * S
    x2d = x.reshape(rows, D)
    itemsize = x2d.dtype.itemsize

    if col_tile is None:
        col_tile = _pick_col_tile(N)
    assert N % col_tile == 0

    if row_tile is None:
        # Per-row VMEM: LN x tile + residual tile + out tile (double buffered)
        # plus the single-buffered f32 normed scratch.
        per_row = (2 * D + 2 * col_tile + 2 * col_tile) * itemsize + D * 4
        fixed = 2 * D * col_tile * itemsize + 2 * col_tile * itemsize + 4 * D * 4
        row_tile = _pick_row_tile(
            rows, per_row, x2d.dtype,
            budget_bytes=max(vmem_budget_bytes - fixed, 8 * per_row))
    assert rows % row_tile == 0, (rows, row_tile)

    out2d = pl.pallas_call(
        fused_ln_linear_residual_kernel,
        out_shape=jax.ShapeDtypeStruct((rows, N), x.dtype),
        grid_spec=pltpu.PrefetchScalarGridSpec(
            num_scalar_prefetch=0,
            grid=(rows // row_tile, N // col_tile),
            in_specs=[
                pl.BlockSpec((row_tile, D), lambda i, j: (i, 0)),        # x (LN, full K)
                pl.BlockSpec((D, col_tile), lambda i, j: (0, j)),        # W
                pl.BlockSpec((1, col_tile), lambda i, j: (0, j)),        # bias
                pl.BlockSpec((1, D), lambda i, j: (0, 0)),               # gamma
                pl.BlockSpec((1, D), lambda i, j: (0, 0)),               # beta
                pl.BlockSpec((row_tile, col_tile), lambda i, j: (i, j)),  # residual x
            ],
            out_specs=pl.BlockSpec((row_tile, col_tile), lambda i, j: (i, j)),
            scratch_shapes=[pltpu.VMEM((row_tile, D), jnp.float32)],
        ),
        compiler_params=pltpu.CompilerParams(
            # Row axis shards across TensorCores (v7x); N axis is "arbitrary"
            # because the normed scratch is carried across it.
            dimension_semantics=("parallel", "arbitrary")),
    )(x2d, w, b.reshape(1, N),
      gamma.reshape(1, D).astype(jnp.float32),
      beta.reshape(1, D).astype(jnp.float32),
      x2d)
    return out2d.reshape(B, S, N)


def sublayer_connection(x, sublayer_fn, gamma, beta):
    """Generic path: Pallas LayerNorm + arbitrary JAX sublayer + residual.

    The residual add is left to plain JAX so XLA fuses it into the sublayer's
    epilogue (no standalone add kernel, no extra HBM pass).
    """
    B, S, D = x.shape
    x2d = x.reshape(B * S, D)
    normed = pallas_layernorm(x2d, gamma, beta).reshape(B, S, D)
    # nn.Dropout in eval mode is the identity.
    return x + sublayer_fn(normed)


# --------------------------------- main ---------------------------------------

if __name__ == "__main__":
    B, S, D = 2, 64, 128   # batch, seq, d_model (lane-dense: D multiple of 128)

    key = jax.random.PRNGKey(0)
    kx, kw, kb, kg, kbe = jax.random.split(key, 5)

    x = jax.random.normal(kx, (B, S, D), dtype=jnp.float32)

    # LayerNorm parameters (perturbed from torch init to exercise the affine).
    gamma = 1.0 + 0.1 * jax.random.normal(kg, (D,), dtype=jnp.float32)
    beta = 0.05 * jax.random.normal(kbe, (D,), dtype=jnp.float32)

    # Example sublayer: Linear(D, D).
    w = jax.random.normal(kw, (D, D), dtype=jnp.float32) / jnp.sqrt(D)
    b = 0.01 * jax.random.normal(kb, (D,), dtype=jnp.float32)

    # Fused path: LN + matmul + bias + residual in a single Pallas kernel.
    out_fused = jax.block_until_ready(pallas_sublayer_linear(x, w, b, gamma, beta))

    # Generic path: Pallas LN + arbitrary JAX sublayer (residual fused by XLA).
    def sublayer_fn(h):  # h: (B, S, D)
        return jnp.einsum("bsd,df->bsf", h, w,
                          precision=jax.lax.Precision.HIGHEST) + b

    out_gen = jax.block_until_ready(sublayer_connection(x, sublayer_fn, gamma, beta))

    # Reference (torch semantics: unbiased std, eps added to std).
    mean = jnp.mean(x, axis=-1, keepdims=True)
    std = jnp.sqrt(jnp.sum((x - mean) ** 2, axis=-1, keepdims=True) / (D - 1))
    normed_ref = gamma * (x - mean) / (std + EPS) + beta
    ref = x + sublayer_fn(normed_ref)

    assert jnp.allclose(out_gen, ref, atol=1e-4, rtol=1e-4), "generic path mismatch"
    # Looser tolerance for the fused path: the in-kernel MXU dot and the XLA
    # reference einsum may use different f32 matmul pass counts.
    assert jnp.allclose(out_fused, ref, atol=2e-2, rtol=2e-2), "fused path mismatch"

    print("KERNEL_OK")
</pallas_src>

<mosaic_0001>
module attributes {stable_mosaic.version = 11 : i64} {
  func.func @fused_ln_linear_residual_kernel(%arg0: i32, %arg1: i32, %arg2: memref<128x128xf32, #tpu.memory_space<vmem>>, %arg3: memref<128x128xf32, #tpu.memory_space<vmem>>, %arg4: memref<1x128xf32, #tpu.memory_space<vmem>>, %arg5: memref<1x128xf32, #tpu.memory_space<vmem>>, %arg6: memref<1x128xf32, #tpu.memory_space<vmem>>, %arg7: memref<128x128xf32, #tpu.memory_space<vmem>>, %arg8: memref<128x128xf32, #tpu.memory_space<vmem>>, %arg9: memref<128x128xf32, #tpu.memory_space<vmem>>) attributes {dimension_semantics = [#tpu.dimension_semantics<parallel>, #tpu.dimension_semantics<arbitrary>], iteration_bounds = array<i64: 1, 1>, scalar_prefetch = 0 : i64, scratch_operands = 1 : i64, tpu.core_type = #tpu.core_type<tc>, window_params = [{transform_indices = @transform_0, window_bounds = array<i64: 128, 128>}, {transform_indices = @transform_1, window_bounds = array<i64: 128, 128>}, {transform_indices = @transform_2, window_bounds = array<i64: 1, 128>}, {pipeline_mode = #tpu.pipeline_mode<synchronous>, transform_indices = @transform_3, window_bounds = array<i64: 1, 128>}, {pipeline_mode = #tpu.pipeline_mode<synchronous>, transform_indices = @transform_4, window_bounds = array<i64: 1, 128>}, {transform_indices = @transform_5, window_bounds = array<i64: 128, 128>}, {transform_indices = @transform_6, window_bounds = array<i64: 128, 128>}]} {
    %c0_i32 = arith.constant 0 : i32
    %0 = arith.cmpi eq, %arg1, %c0_i32 : i32
    %1 = arith.extui %0 : i1 to i32
    %c0_i32_0 = arith.constant 0 : i32
    %2 = arith.cmpi ne, %1, %c0_i32_0 : i32
    scf.if %2 {
      %c0_10 = arith.constant 0 : index
      %c0_11 = arith.constant 0 : index
      %12 = vector.load %arg2[%c0_10, %c0_11] : memref<128x128xf32, #tpu.memory_space<vmem>>, vector<128x128xf32>
      %cst_12 = arith.constant dense<0.000000e+00> : vector<128xf32>
      %13 = vector.multi_reduction <add>, %12, %cst_12 [1] : vector<128x128xf32> to vector<128xf32>
      %14 = vector.shape_cast %13 : vector<128xf32> to vector<128x1xf32>
      %cst_13 = arith.constant 1.280000e+02 : f32
      %15 = vector.broadcast %cst_13 : f32 to vector<128x1xf32>
      %16 = arith.divf %14, %15 : vector<128x1xf32>
      %17 = vector.broadcast %16 : vector<128x1xf32> to vector<128x128xf32>
      %18 = arith.subf %12, %17 : vector<128x128xf32>
      %19 = arith.mulf %18, %18 : vector<128x128xf32>
      %cst_14 = arith.constant dense<0.000000e+00> : vector<128xf32>
      %20 = vector.multi_reduction <add>, %19, %cst_14 [1] : vector<128x128xf32> to vector<128xf32>
      %21 = vector.shape_cast %20 : vector<128xf32> to vector<128x1xf32>
      %cst_15 = arith.constant 0.00787401571 : f32
      %22 = vector.broadcast %cst_15 : f32 to vector<128x1xf32>
      %23 = arith.mulf %21, %22 : vector<128x1xf32>
      %24 = math.sqrt %23 : vector<128x1xf32>
      %cst_16 = arith.constant 9.99999997E-7 : f32
      %25 = vector.broadcast %cst_16 : f32 to vector<128x1xf32>
      %26 = arith.addf %24, %25 : vector<128x1xf32>
      %27 = tpu.reciprocal %26 : vector<128x1xf32> -> vector<128x1xf32>
      %c0_17 = arith.constant 0 : index
      %c0_18 = arith.constant 0 : index
      %28 = vector.load %arg5[%c0_17, %c0_18] : memref<1x128xf32, #tpu.memory_space<vmem>>, vector<1x128xf32>
      %29 = vector.broadcast %28 : vector<1x128xf32> to vector<128x128xf32>
      %30 = arith.mulf %29, %18 : vector<128x128xf32>
      %31 = vector.broadcast %27 : vector<128x1xf32> to vector<128x128xf32>
      %32 = arith.mulf %30, %31 : vector<128x128xf32>
      %c0_19 = arith.constant 0 : index
      %c0_20 = arith.constant 0 : index
      %33 = vector.load %arg6[%c0_19, %c0_20] : memref<1x128xf32, #tpu.memory_space<vmem>>, vector<1x128xf32>
      %34 = vector.broadcast %33 : vector<1x128xf32> to vector<128x128xf32>
      %35 = arith.addf %32, %34 : vector<128x128xf32>
      %c0_21 = arith.constant 0 : index
      %c0_22 = arith.constant 0 : index
      %36 = vector.load %arg9[%c0_21, %c0_22] : memref<128x128xf32, #tpu.memory_space<vmem>>, vector<128x128xf32>
      tpu.vector_store %arg9[%c0_21, %c0_22], %35 {strides = array<i32>} : memref<128x128xf32, #tpu.memory_space<vmem>>, vector<128x128xf32>,
    } else {
    }
    %c0 = arith.constant 0 : index
    %c0_1 = arith.constant 0 : index
    %3 = vector.load %arg9[%c0, %c0_1] : memref<128x128xf32, #tpu.memory_space<vmem>>, vector<128x128xf32>
    %c0_2 = arith.constant 0 : index
    %c0_3 = arith.constant 0 : index
    %4 = vector.load %arg3[%c0_2, %c0_3] : memref<128x128xf32, #tpu.memory_space<vmem>>, vector<128x128xf32>
    %cst = arith.constant dense<0.000000e+00> : vector<128x128xf32>
    %5 = tpu.matmul %3, %4, %cst {dimension_numbers = #tpu.dot_dimension_numbers<[1], [0], [0], [1], [0, 0, 1, 1], [], []>} : vector<128x128xf32>, vector<128x128xf32>, vector<128x128xf32> -> vector<128x128xf32>
    %c0_4 = arith.constant 0 : index
    %c0_5 = arith.constant 0 : index
    %6 = vector.load %arg7[%c0_4, %c0_5] : memref<128x128xf32, #tpu.memory_space<vmem>>, vector<128x128xf32>
    %7 = arith.addf %6, %5 : vector<128x128xf32>
    %c0_6 = arith.constant 0 : index
    %c0_7 = arith.constant 0 : index
    %8 = vector.load %arg4[%c0_6, %c0_7] : memref<1x128xf32, #tpu.memory_space<vmem>>, vector<1x128xf32>
    %9 = vector.broadcast %8 : vector<1x128xf32> to vector<128x128xf32>
    %10 = arith.addf %7, %9 : vector<128x128xf32>
    %c0_8 = arith.constant 0 : index
    %c0_9 = arith.constant 0 : index
    %11 = vector.load %arg8[%c0_8, %c0_9] : memref<128x128xf32, #tpu.memory_space<vmem>>, vector<128x128xf32>
    tpu.vector_store %arg8[%c0_8, %c0_9], %10 {strides = array<i32>} : memref<128x128xf32, #tpu.memory_space<vmem>>, vector<128x128xf32>,
    return
  }
  func.func @transform_0(%arg0: i32, %arg1: i32) -> (i32, i32) {
    %c0_i32 = arith.constant 0 : i32
    %c0_i32_0 = arith.constant 0 : i32
    return %arg0, %c0_i32 : i32, i32
  }
  func.func @transform_1(%arg0: i32, %arg1: i32) -> (i32, i32) {
    %c0_i32 = arith.constant 0 : i32
    %c0_i32_0 = arith.constant 0 : i32
    return %c0_i32, %arg1 : i32, i32
  }
  func.func @transform_2(%arg0: i32, %arg1: i32) -> (i32, i32) {
    %c0_i32 = arith.constant 0 : i32
    %c0_i32_0 = arith.constant 0 : i32
    return %c0_i32, %arg1 : i32, i32
  }
  func.func @transform_3(%arg0: i32, %arg1: i32) -> (i32, i32) {
    %c0_i32 = arith.constant 0 : i32
    %c0_i32_0 = arith.constant 0 : i32
    %c0_i32_1 = arith.constant 0 : i32
    return %c0_i32, %c0_i32_0 : i32, i32
  }
  func.func @transform_4(%arg0: i32, %arg1: i32) -> (i32, i32) {
    %c0_i32 = arith.constant 0 : i32
    %c0_i32_0 = arith.constant 0 : i32
    %c0_i32_1 = arith.constant 0 : i32
    return %c0_i32, %c0_i32_0 : i32, i32
  }
  func.func @transform_5(%arg0: i32, %arg1: i32) -> (i32, i32) {
    %c0_i32 = arith.constant 0 : i32
    return %arg0, %arg1 : i32, i32
  }
  func.func @transform_6(%arg0: i32, %arg1: i32) -> (i32, i32) {
    %c0_i32 = arith.constant 0 : i32
    return %arg0, %arg1 : i32, i32
  }
}

</mosaic_0001>

<bundles_post_ra>
// kernel: tpu_custom_call.1
= control target key start
LH: loop header
LB: loop body
LE: loop exit
PB: predicated region body
PF: predicated region fallthrough
CT: control target
= control target key end

     0   :  { %11 = vsyncpa [#allocation4], 0  ;;  %s1910_s0 = inlined_call_operand.hbm [shape: f32[128,128], index: 0, kind: input, shape index: {}]   ;;  %s1911_s1 = inlined_call_operand.hbm [shape: f32[128,128], index: 1, kind: input, shape index: {}]   ;;  %s1912_s2 = inlined_call_operand.vmem [shape: f32[1,128], index: 2, kind: input, shape index: {}]   ;;  %s1913_s3 = inlined_call_operand.vmem [shape: f32[1,128], index: 3, kind: input, shape index: {}]   ;;  %s1914_s4 = inlined_call_operand.vmem [shape: f32[1,128], index: 4, kind: input, shape index: {}]   ;;  %s1915_s5 = inlined_call_operand.hbm [shape: f32[128,128], index: 5, kind: input, shape index: {}]   ;;  %s1916_s6 = inlined_call_operand.hbm [shape: f32[128,128], index: 6, kind: output, shape index: {}]  }
   0x1   :  { %12 = vsyncpa [#allocation7], 0 }
   0x2   :  { %13 = vsyncpa [#allocation5], 0  ;;  %s31_s23 = sshll.u32 %s1911_s1, 4  ;;  %s1141_s24 = smov [#allocation6]   ;;  %s32_s23 = int_to_ptr.hbm [resolvable:$true] %s31_s23 }
   0x3   :  { %s33_s25 = sshll.u32 %s1141_s24, 4  ;;  %s18_s28 = sshll.u32 %s1910_s0, 4  ;;  %s34_s25 = int_to_ptr.vmem [resolvable:$true] %s33_s25  ;;  %s19_s28 = int_to_ptr.hbm [resolvable:$true] %s18_s28 }
   0x4   :  { %s1142_s29 = smov 128   ;;  %s1143_s30 = smov 8  }
   0x5   :  { %39 = dma.hbm_to_vmem [thread:$0]  %s32_s23, 2048, %s34_s25, [#allocation7], %s1142_s29, %s1142_s29, %s1143_s30  }
   0x6   :  { %s1144_s7 = smov [#allocation3]   ;;  %s50_s1 = sshll.u32 %s1915_s5, 4  ;;  %s51_s1 = int_to_ptr.hbm [resolvable:$true] %s50_s1 }
   0x7   :  { %s20_s8 = sshll.u32 %s1144_s7, 4  ;;  %s1145_s0 = smov [#allocation8]   ;;  %s21_s8 = int_to_ptr.vmem [resolvable:$true] %s20_s8 }
   0x8   :  { %26 = dma.hbm_to_vmem [thread:$0]  %s19_s28, 2048, %s21_s8, [#allocation4], %s1142_s29, %s1142_s29, %s1143_s30  }
   0x9   :  { %s52_s11 = sshll.u32 %s1145_s0, 4  ;;  %s53_s11 = int_to_ptr.vmem [resolvable:$true] %s52_s11 }
   0xa   :  { %58 = dma.hbm_to_vmem [thread:$0]  %s51_s1, 2048, %s53_s11, [#allocation7], %s1142_s29, %s1142_s29, %s1143_s30  }
   0xb   :  { %1135 = dma.done.wait [#allocation4], 2048  }
   0xc   :  { %1136 = vsyncadd [#allocation4], 4294965248 }
   0xd   :  { %1137 = dma.done.wait [#allocation7], 4096  }
   0xe   :  { %1138 = vsyncadd [#allocation7], 4294963200  ;;  %v1201_v0 = vld [vmem:[#allocation3 + $0x48] sm:$0xff]  ;;  %v83_v1 = vld [vmem:[#allocation3 + $0x40] sm:$0xff]  ;;  %v1146_v16 = vmov 128.0   ;;  %s901_s18 = sshll.u32 %s1916_s6, 4  ;;  %s902_s18 = int_to_ptr.hbm [resolvable:$true] %s901_s18 }
   0xf   :  { %v75_v2 = vld [vmem:[#allocation3] sm:$0xff]  ;;  %109 = vadd.xlane.f32.xlu2 %v1201_v0  ;;  %107 = vadd.xlane.f32.xlu0 %v83_v1  ;;  %v88_v3 = vld [vmem:[#allocation3 + $0x68] sm:$0xff]  ;;  %v85_v6 = vld [vmem:[#allocation3 + $0x50] sm:$0xff]  ;;  %973 = vrcp.f32 %v1146_v16 }
  0x10   :  { %91 = vadd.xlane.f32.xlu1 %v75_v2  ;;  %v87_v4 = vld [vmem:[#allocation3 + $0x60] sm:$0xff]  ;;  %v76_v7 = vld [vmem:[#allocation3 + $0x8] sm:$0xff]  ;;  %v1207_v9 = vld [vmem:[#allocation3 + $0x30] sm:$0xff] }
  0x11   :  { %v79_v5 = vld [vmem:[#allocation3 + $0x20] sm:$0xff]  ;;  %v1204_v8 = vld [vmem:[#allocation3 + $0x28] sm:$0xff]  ;;  %v1209_v10 = vld [vmem:[#allocation3 + $0x70] sm:$0xff] }
  0x12   :  { %v1211_v11 = vld [vmem:[#allocation3 + $0x10] sm:$0xff]  ;;  %v1216_v12 = vld [vmem:[#allocation3 + $0x18] sm:$0xff] }
  0x13   :  { %v1218_v13 = vld [vmem:[#allocation3 + $0x58] sm:$0xff] }
  0x14   :  { %v1220_v14 = vld [vmem:[#allocation3 + $0x78] sm:$0xff] }
  0x15   :  { %v1225_v15 = vld [vmem:[#allocation3 + $0x38] sm:$0xff]  ;;  %v974_v17 = vpop.eup %973 }
  0x16   :  { %v124_v18 = vmul.f32 128.0, %v974_v17  ;;  %vm128_vm0 = vweird.f32 %v974_v17 }
  0x17   :  { %117 = vadd.xlane.f32.xlu2 %v88_v3  ;;  %115 = vadd.xlane.f32.xlu0 %v87_v4 }
  0x18   :  { %99 = vadd.xlane.f32.xlu1 %v79_v5  ;;  %v125_v19 = vsub.f32 1.0, %v124_v18 }
  0x1a   :  { %v126_v20 = vmul.f32 %v974_v17, %v125_v19 }
  0x1c   :  { %v127_v21 = vadd.f32 %v974_v17, %v126_v20 }
  0x1e   :  { %v1228_v22 = vsel %vm128_vm0, %v974_v17, %v127_v21  ;;  %v1299_v17 = vld [vmem:[%s1913_s3] ss:$0 sm:$0xff] }
  0x1f   :  { %111 = vadd.xlane.f32.xlu2 %v85_v6  ;;  %93 = vadd.xlane.f32.xlu0 %v76_v7 }
  0x20   :  { %101 = vadd.xlane.f32.xlu1 %v1204_v8 }
  0x27   :  { %103 = vadd.xlane.f32.xlu2 %v1207_v9  ;;  %119 = vadd.xlane.f32.xlu0 %v1209_v10 }
  0x28   :  { %95 = vadd.xlane.f32.xlu1 %v1211_v11 }
  0x2f   :  { %97 = vadd.xlane.f32.xlu2 %v1216_v12  ;;  %113 = vadd.xlane.f32.xlu0 %v1218_v13 }
  0x30   :  { %121 = vadd.xlane.f32.xlu1 %v1220_v14 }
  0x37   :  { %105 = vadd.xlane.f32.xlu0 %v1225_v15 }
  0x82   :  { %v110_v23 = vpop.xlane.xlu2 %109  ;;  %v108_v24 = vpop.xlane.xlu0 %107 }
  0x83   :  { %v138_v25 = vmul.f32 %v1228_v22, %v108_v24  ;;  %v92_v26 = vpop.xlane.xlu1 %91  ;;  %v139_v41 = vmul.f32 %v1228_v22, %v110_v23 }
  0x84   :  { %v130_v27 = vmul.f32 %v1228_v22, %v92_v26 }
  0x85   :  { %v1232_v28 = vsub.f32 %v83_v1, %v138_v25  ;;  %v1257_v47 = vsub.f32 %v1201_v0, %v139_v41  ;;  %v754_v41 = vld [vmem:[#allocation6 + $0x40] sm:$0xff] }
  0x86   :  { %v1234_v29 = vsub.f32 %v75_v2, %v130_v27 }
  0x87   :  { %v170_v30 = vmul.f32 %v1232_v28, %v1232_v28  ;;  %v171_v54 = vmul.f32 %v1257_v47, %v1257_v47 }
  0x88   :  { %v162_v31 = vmul.f32 %v1234_v29, %v1234_v29 }
  0x89   :  { %194 = vadd.xlane.f32.xlu1 %v170_v30 }
  0x8a   :  { %178 = vadd.xlane.f32.xlu0 %v162_v31  ;;  %v118_v32 = vpop.xlane.xlu2 %117  ;;  %v116_v33 = vpop.xlane.xlu0 %115 }
  0x8b   :  { %v143_v34 = vmul.f32 %v1228_v22, %v118_v32  ;;  %v142_v35 = vmul.f32 %v1228_v22, %v116_v33  ;;  %v100_v36 = vpop.xlane.xlu1 %99  ;;  %v761_v32 = vld [vmem:[#allocation6 + $0x78] sm:$0xff]  ;;  %v760_v33 = vld [vmem:[#allocation6 + $0x70] sm:$0xff] }
  0x8c   :  { %v134_v37 = vmul.f32 %v1228_v22, %v100_v36  ;;  %762 = vmatpush.msra.mxu0 %v761_v32  ;;  %916 = vmatpush.msra.mxu2 %v761_v32  ;;  %v755_v36 = vld [vmem:[#allocation6 + $0x48] sm:$0xff] }
  0x8d   :  { %v1243_v38 = vsub.f32 %v88_v3, %v143_v34  ;;  %v1245_v39 = vsub.f32 %v87_v4, %v142_v35  ;;  %915 = vmatpush.msra.mxu1 %v761_v32  ;;  %917 = vmatpush.msra.mxu3 %v761_v32  ;;  %v759_v34 = vld [vmem:[#allocation6 + $0x68] sm:$0xff]  ;;  %v756_v35 = vld [vmem:[#allocation6 + $0x50] sm:$0xff] }
  0x8e   :  { %v1247_v40 = vsub.f32 %v79_v5, %v134_v37  ;;  %763 = vmatpush.msra.mxu0 %v760_v33  ;;  %919 = vmatpush.msra.mxu2 %v760_v33 }
  0x8f   :  { %v174_v42 = vmul.f32 %v1245_v39, %v1245_v39  ;;  %v175_v43 = vmul.f32 %v1243_v38, %v1243_v38  ;;  %918 = vmatpush.msra.mxu1 %v760_v33  ;;  %920 = vmatpush.msra.mxu3 %v760_v33 }
  0x90   :  { %v166_v44 = vmul.f32 %v1247_v40, %v1247_v40  ;;  %764 = vmatpush.msra.mxu0 %v759_v34  ;;  %922 = vmatpush.msra.mxu2 %v759_v34 }
  0x91   :  { %202 = vadd.xlane.f32.xlu2 %v174_v42  ;;  %921 = vmatpush.msra.mxu1 %v759_v34 }
  0x92   :  { %204 = vadd.xlane.f32.xlu0 %v175_v43  ;;  %186 = vadd.xlane.f32.xlu1 %v166_v44  ;;  %v112_v45 = vpop.xlane.xlu2 %111  ;;  %v94_v46 = vpop.xlane.xlu0 %93 }
  0x93   :  { %v140_v48 = vmul.f32 %v1228_v22, %v112_v45  ;;  %v131_v49 = vmul.f32 %v1228_v22, %v94_v46  ;;  %v102_v50 = vpop.xlane.xlu1 %101  ;;  %923 = vmatpush.msra.mxu3 %v759_v34  ;;  %v753_v45 = vld [vmem:[#allocation6 + $0x38] sm:$0xff]  ;;  %v752_v46 = vld [vmem:[#allocation6 + $0x30] sm:$0xff] }
  0x94   :  { %v135_v53 = vmul.f32 %v1228_v22, %v102_v50 }
  0x95   :  { %v1261_v51 = vsub.f32 %v85_v6, %v140_v48  ;;  %v1263_v52 = vsub.f32 %v76_v7, %v131_v49  ;;  %v751_v48 = vld [vmem:[#allocation6 + $0x28] sm:$0xff] }
  0x96   :  { %v1273_v57 = vsub.f32 %v1204_v8, %v135_v53 }
  0x97   :  { %v172_v55 = vmul.f32 %v1261_v51, %v1261_v51  ;;  %v163_v56 = vmul.f32 %v1263_v52, %v1263_v52 }
  0x98   :  { %v167_v1 = vmul.f32 %v1273_v57, %v1273_v57 }
  0x99   :  { %196 = vadd.xlane.f32.xlu2 %v171_v54 }
  0x9a   :  { %198 = vadd.xlane.f32.xlu0 %v172_v55  ;;  %180 = vadd.xlane.f32.xlu1 %v163_v56  ;;  %v104_v58 = vpop.xlane.xlu2 %103  ;;  %v120_v59 = vpop.xlane.xlu0 %119  ;;  %v750_v56 = vld [vmem:[#allocation6 + $0x20] sm:$0xff] }
  0x9b   :  { %v136_v60 = vmul.f32 %v1228_v22, %v104_v58  ;;  %v144_v61 = vmul.f32 %v1228_v22, %v120_v59  ;;  %v96_v62 = vpop.xlane.xlu1 %95 }
  0x9c   :  { %v132_v2 = vmul.f32 %v1228_v22, %v96_v62 }
  0x9d   :  { %v1278_v63 = vsub.f32 %v1207_v9, %v136_v60  ;;  %v1281_v0 = vsub.f32 %v1209_v10, %v144_v61 }
  0x9e   :  { %v1291_v5 = vsub.f32 %v1211_v11, %v132_v2 }
  0x9f   :  { %v168_v3 = vmul.f32 %v1278_v63, %v1278_v63  ;;  %v176_v4 = vmul.f32 %v1281_v0, %v1281_v0 }
  0xa0   :  { %v164_v19 = vmul.f32 %v1291_v5, %v1291_v5 }
  0xa1   :  { %188 = vadd.xlane.f32.xlu2 %v167_v1  ;;  %v749_v1 = vld [vmem:[#allocation6 + $0x18] sm:$0xff] }
  0xa2   :  { %190 = vadd.xlane.f32.xlu0 %v168_v3  ;;  %206 = vadd.xlane.f32.xlu1 %v176_v4  ;;  %v98_v6 = vpop.xlane.xlu2 %97  ;;  %v114_v7 = vpop.xlane.xlu0 %113  ;;  %v748_v4 = vld [vmem:[#allocation6 + $0x10] sm:$0xff] }
  0xa3   :  { %v133_v8 = vmul.f32 %v1228_v22, %v98_v6  ;;  %v141_v9 = vmul.f32 %v1228_v22, %v114_v7  ;;  %v122_v10 = vpop.xlane.xlu1 %121 }
  0xa4   :  { %v145_v16 = vmul.f32 %v1228_v22, %v122_v10 }
  0xa5   :  { %v149_v18 = vsub.f32 %v1216_v12, %v133_v8  ;;  %v157_v11 = vsub.f32 %v1218_v13, %v141_v9  ;;  %v747_v8 = vld [vmem:[#allocation6 + $0x8] sm:$0xff] }
  0xa6   :  { %v161_v20 = vsub.f32 %v1220_v14, %v145_v16 }
  0xa7   :  { %v1307_v21 = vmul.f32 %v1299_v17, %v149_v18  ;;  %v1310_v23 = vmul.f32 %v1299_v17, %v157_v11  ;;  %v165_v24 = vmul.f32 %v149_v18, %v149_v18  ;;  %v173_v25 = vmul.f32 %v157_v11, %v157_v11 }
  0xa8   :  { %v1313_v26 = vmul.f32 %v1299_v17, %v161_v20  ;;  %v177_v14 = vmul.f32 %v161_v20, %v161_v20 }
  0xa9   :  { %1917 = vst [vmem:[#allocation13_spill] sm:$0xff] %v1310_v23  ;;  %182 = vadd.xlane.f32.xlu2 %v164_v19 }
  0xaa   :  { %1918 = vst [vmem:[#allocation14_spill] sm:$0xff] %v1313_v26  ;;  %184 = vadd.xlane.f32.xlu0 %v165_v24  ;;  %200 = vadd.xlane.f32.xlu1 %v173_v25  ;;  %v106_v12 = vpop.xlane.xlu0 %105  ;;  %v746_v24 = vld [vmem:[#allocation6] sm:$0xff] }
  0xab   :  { %v137_v13 = vmul.f32 %v1228_v22, %v106_v12  ;;  %v757_v22 = vld [vmem:[#allocation6 + $0x58] sm:$0xff] }
  0xad   :  { %v153_v27 = vsub.f32 %v1225_v15, %v137_v13  ;;  %v758_v15 = vld [vmem:[#allocation6 + $0x60] sm:$0xff] }
  0xae   :  { %765 = vmatpush.msra.mxu0 %v758_v15  ;;  %925 = vmatpush.msra.mxu2 %v758_v15 }
  0xaf   :  { %v1318_v30 = vmul.f32 %v1299_v17, %v153_v27  ;;  %v169_v31 = vmul.f32 %v153_v27, %v153_v27  ;;  %924 = vmatpush.msra.mxu1 %v758_v15  ;;  %926 = vmatpush.msra.mxu3 %v758_v15 }
  0xb0   :  { %766 = vmatpush.msra.mxu0 %v757_v22  ;;  %928 = vmatpush.msra.mxu2 %v757_v22 }
  0xb1   :  { %1919 = vst [vmem:[#allocation15_spill] sm:$0xff] %v1318_v30  ;;  %208 = vadd.xlane.f32.xlu2 %v177_v14  ;;  %927 = vmatpush.msra.mxu1 %v757_v22 }
  0xb2   :  { %192 = vadd.xlane.f32.xlu1 %v169_v31  ;;  %929 = vmatpush.msra.mxu3 %v757_v22  ;;  %v1360_v22 = vmul.f32 %v1299_v17, %v1257_v47 }
  0xb3   :  { %767 = vmatpush.msra.mxu0 %v756_v35  ;;  %931 = vmatpush.msra.mxu2 %v756_v35 }
  0xb4   :  { %930 = vmatpush.msra.mxu1 %v756_v35  ;;  %932 = vmatpush.msra.mxu3 %v756_v35 }
  0xb5   :  { %768 = vmatpush.msra.mxu0 %v755_v36  ;;  %934 = vmatpush.msra.mxu2 %v755_v36 }
  0xb6   :  { %933 = vmatpush.msra.mxu1 %v755_v36  ;;  %935 = vmatpush.msra.mxu3 %v755_v36 }
  0xb7   :  { %769 = vmatpush.msra.mxu0 %v754_v41  ;;  %937 = vmatpush.msra.mxu2 %v754_v41 }
  0xb8   :  { %936 = vmatpush.msra.mxu1 %v754_v41  ;;  %938 = vmatpush.msra.mxu3 %v754_v41 }
  0xb9   :  { %770 = vmatpush.msra.mxu0 %v753_v45  ;;  %940 = vmatpush.msra.mxu2 %v753_v45 }
  0xba   :  { %939 = vmatpush.msra.mxu1 %v753_v45  ;;  %941 = vmatpush.msra.mxu3 %v753_v45 }
  0xbb   :  { %771 = vmatpush.msra.mxu0 %v752_v46  ;;  %943 = vmatpush.msra.mxu2 %v752_v46 }
  0xbc   :  { %942 = vmatpush.msra.mxu1 %v752_v46  ;;  %944 = vmatpush.msra.mxu3 %v752_v46  ;;  %v1378_v46 = vmul.f32 %v1299_v17, %v1234_v29 }
  0xbd   :  { %772 = vmatpush.msra.mxu0 %v751_v48  ;;  %946 = vmatpush.msra.mxu2 %v751_v48 }
  0xbe   :  { %945 = vmatpush.msra.mxu1 %v751_v48  ;;  %947 = vmatpush.msra.mxu3 %v751_v48 }
  0xbf   :  { %773 = vmatpush.msra.mxu0 %v750_v56  ;;  %949 = vmatpush.msra.mxu2 %v750_v56 }
  0xc0   :  { %948 = vmatpush.msra.mxu1 %v750_v56  ;;  %950 = vmatpush.msra.mxu3 %v750_v56 }
  0xc1   :  { %774 = vmatpush.msra.mxu0 %v749_v1  ;;  %952 = vmatpush.msra.mxu2 %v749_v1 }
  0xc2   :  { %951 = vmatpush.msra.mxu1 %v749_v1  ;;  %953 = vmatpush.msra.mxu3 %v749_v1 }
  0xc3   :  { %775 = vmatpush.msra.mxu0 %v748_v4  ;;  %955 = vmatpush.msra.mxu2 %v748_v4 }
  0xc4   :  { %954 = vmatpush.msra.mxu1 %v748_v4  ;;  %956 = vmatpush.msra.mxu3 %v748_v4 }
  0xc5   :  { %776 = vmatpush.msra.mxu0 %v747_v8  ;;  %958 = vmatpush.msra.mxu2 %v747_v8 }
  0xc6   :  { %957 = vmatpush.msra.mxu1 %v747_v8  ;;  %959 = vmatpush.msra.mxu3 %v747_v8 }
  0xc7   :  { %777 = vmatpush.msra.mxu0 %v746_v24  ;;  %961 = vmatpush.msra.mxu2 %v746_v24 }
  0xc8   :  { %960 = vmatpush.msra.mxu1 %v746_v24  ;;  %962 = vmatpush.msra.mxu3 %v746_v24 }
  0xfc   :  { %v195_v37 = vpop.xlane.xlu1 %194 }
  0xfd   :  { %v179_v42 = vpop.xlane.xlu0 %178  ;;  %v1320_v43 = vmul.f32 0.007874016, %v195_v37 }
  0xfe   :  { %v1322_v44 = vmul.f32 0.007874016, %v179_v42  ;;  %v1371_v42 = vmul.f32 %v1299_v17, %v1232_v28  ;;  %v1386_v28 = vmul.f32 %v1299_v17, %v1243_v38 }
  0xff   :  { %975 = vrsqrt.f32 %v1320_v43  ;;  %vm329_vm2 = vcmp.eq.f32.partialorder %v1320_v43, inf  ;;  %vm331_vm4 = vcmp.eq.f32.partialorder %v1320_v43, 0.0 }
 0x100   :  { %977 = vrsqrt.f32 %v1322_v44  ;;  %vm233_vm1 = vcmp.eq.f32.partialorder %v1322_v44, inf  ;;  %v236_v41 = vand.u32 2147483648, %v1322_v44  ;;  %vm235_vm3 = vcmp.eq.f32.partialorder %v1322_v44, 0.0 }
 0x104   :  { %v203_v49 = vpop.xlane.xlu2 %202 }
 0x105   :  { %v976_v50 = vpop.eup %975  ;;  %v1326_v53 = vmul.f32 0.007874016, %v203_v49  ;;  %v205_v54 = vpop.xlane.xlu0 %204 }
 0x106   :  { %v187_v55 = vpop.xlane.xlu1 %186  ;;  %v978_v58 = vpop.eup %977  ;;  %v323_v59 = vmul.f32 %v976_v50, %v1320_v43  ;;  %v1329_v60 = vmul.f32 0.007874016, %v205_v54  ;;  %v332_v54 = vand.u32 2147483648, %v1320_v43 }
 0x107   :  { %v1331_v61 = vmul.f32 0.007874016, %v187_v55  ;;  %v227_v62 = vmul.f32 %v978_v58, %v1322_v44  ;;  %979 = vrsqrt.f32 %v1326_v53  ;;  %vm377_vm11 = vcmp.eq.f32.partialorder %v1326_v53, inf }
 0x108   :  { %v324_v2 = vmul.f32 %v976_v50, %v323_v59  ;;  %981 = vrsqrt.f32 %v1329_v60  ;;  %vm379_vm13 = vcmp.eq.f32.partialorder %v1326_v53, 0.0 }
 0x109   :  { %v228_v3 = vmul.f32 %v978_v58, %v227_v62  ;;  %983 = vrsqrt.f32 %v1331_v61  ;;  %vm281_vm5 = vcmp.eq.f32.partialorder %v1331_v61, inf  ;;  %vm283_vm6 = vcmp.eq.f32.partialorder %v1331_v61, 0.0 }
 0x10a   :  { %v325_v6 = vmul.f32 0.5, %v324_v2 }
 0x10b   :  { %v229_v7 = vmul.f32 0.5, %v228_v3 }
 0x10c   :  { %v326_v9 = vsub.f32 1.5, %v325_v6  ;;  %v197_v10 = vpop.xlane.xlu2 %196 }
 0x10d   :  { %v1337_v16 = vpop.eup %979  ;;  %v230_v18 = vsub.f32 1.5, %v229_v7  ;;  %v1339_v11 = vmul.f32 0.007874016, %v197_v10  ;;  %v199_v19 = vpop.xlane.xlu0 %198 }
 0x10e   :  { %v181_v20 = vpop.xlane.xlu1 %180  ;;  %v1341_v25 = vpop.eup %981  ;;  %v327_v12 = vmul.f32 %v976_v50, %v326_v9  ;;  %v371_v13 = vmul.f32 %v1337_v16, %v1326_v53  ;;  %v1345_v27 = vmul.f32 0.007874016, %v199_v19  ;;  %v1419_v19 = vmul.f32 %v1299_v17, %v1261_v51 }
 0x10f   :  { %v1347_v14 = vmul.f32 0.007874016, %v181_v20  ;;  %v1349_v31 = vpop.eup %983  ;;  %v231_v32 = vmul.f32 %v978_v58, %v230_v18  ;;  %v383_v33 = vmul.f32 %v1341_v25, %v1329_v60  ;;  %985 = vrsqrt.f32 %v1339_v11 }
 0x110   :  { %v328_v34 = vmul.f32 %v327_v12, %v1320_v43  ;;  %v275_v15 = vmul.f32 %v1349_v31, %v1331_v61  ;;  %987 = vrsqrt.f32 %v1345_v27  ;;  %v372_v36 = vmul.f32 %v1337_v16, %v371_v13 }
 0x111   :  { %v232_v35 = vmul.f32 %v231_v32, %v1322_v44  ;;  %989 = vrsqrt.f32 %v1347_v14  ;;  %v384_v37 = vmul.f32 %v1341_v25, %v383_v33  ;;  %v1415_v18 = vmul.f32 %v1299_v17, %v1247_v40 }
 0x112   :  { %v330_v45 = vsel %vm329_vm2, %v1320_v43, %v328_v34  ;;  %v276_v48 = vmul.f32 %v1349_v31, %v275_v15  ;;  %v373_v56 = vmul.f32 0.5, %v372_v36  ;;  %v1408_v43 = vmul.f32 %v1299_v17, %v1245_v39 }
 0x113   :  { %v234_v47 = vsel %vm233_vm1, %v1322_v44, %v232_v35  ;;  %v385_v62 = vmul.f32 0.5, %v384_v37  ;;  %v333_v3 = vsel %vm331_vm4, %v332_v54, %v330_v45  ;;  %v1429_v13 = vmul.f32 %v1299_v17, %v1263_v52 }
 0x114   :  { %v189_v49 = vpop.xlane.xlu2 %188  ;;  %v237_v50 = vsel %vm235_vm3, %v236_v41, %v234_v47  ;;  %v277_v8 = vmul.f32 0.5, %v276_v48  ;;  %v374_v39 = vsub.f32 1.5, %v373_v56  ;;  %v1425_v12 = vadd.f32 1e-06, %v333_v3 }
 0x115   :  { %v1382_v55 = vpop.eup %985  ;;  %v191_v44 = vpop.xlane.xlu0 %190  ;;  %v1388_v58 = vmul.f32 0.007874016, %v189_v49  ;;  %v1404_v7 = vadd.f32 1e-06, %v237_v50  ;;  %v386_v40 = vsub.f32 1.5, %v385_v62  ;;  %v1434_v51 = vmul.f32 %v1299_v17, %v1273_v57 }
 0x116   :  { %v207_v59 = vpop.xlane.xlu1 %206  ;;  %v1391_v29 = vpop.eup %987  ;;  %v335_v1 = vmul.f32 %v1382_v55, %v1339_v11  ;;  %v1395_v2 = vmul.f32 0.007874016, %v191_v44  ;;  %v278_v33 = vsub.f32 1.5, %v277_v8  ;;  %v1440_v37 = vmul.f32 %v1299_v17, %v1278_v63 }
 0x117   :  { %v1397_v4 = vpop.eup %989  ;;  %v347_v38 = vmul.f32 %v1391_v29, %v1345_v27  ;;  %991 = vrsqrt.f32 %v1388_v58  ;;  %v1402_v6 = vmul.f32 0.007874016, %v207_v59  ;;  %v1444_v52 = vmul.f32 %v1299_v17, %v1281_v0 }
 0x118   :  { %v336_v9 = vmul.f32 %v1382_v55, %v335_v1  ;;  %v239_v10 = vmul.f32 %v1397_v4, %v1347_v14  ;;  %993 = vrsqrt.f32 %v1395_v2  ;;  %v1448_v41 = vmul.f32 %v1299_v17, %v1291_v5 }
 0x119   :  { %v348_v20 = vmul.f32 %v1391_v29, %v347_v38  ;;  %995 = vrsqrt.f32 %v1402_v6  ;;  %v375_v48 = vmul.f32 %v1337_v16, %v374_v39  ;;  %v387_v0 = vmul.f32 %v1341_v25, %v386_v40 }
 0x11a   :  { %v240_v24 = vmul.f32 %v1397_v4, %v239_v10  ;;  %v337_v32 = vmul.f32 0.5, %v336_v9  ;;  %997 = vrcp.f32 %v1404_v7  ;;  %v279_v16 = vmul.f32 %v1349_v31, %v278_v33 }
 0x11b   :  { %v349_v34 = vmul.f32 0.5, %v348_v20  ;;  %999 = vrcp.f32 %v1425_v12  ;;  %v445_v25 = vand.u32 2147483648, %v1404_v7  ;;  %v1476_v38 = vmul.f32 %v375_v48, %v1326_v53 }
 0x11c   :  { %v241_v15 = vmul.f32 0.5, %v240_v24  ;;  %v183_v35 = vpop.xlane.xlu2 %182  ;;  %v338_v54 = vsub.f32 1.5, %v337_v32  ;;  %v1483_v10 = vmul.f32 %v387_v0, %v1329_v60  ;;  %v280_v40 = vmul.f32 %v279_v16, %v1331_v61 }
 0x11d   :  { %v1436_v36 = vpop.eup %991  ;;  %v185_v57 = vpop.xlane.xlu0 %184  ;;  %v1450_v47 = vmul.f32 0.007874016, %v183_v35  ;;  %v350_v56 = vsub.f32 1.5, %v349_v34  ;;  %vm439_vm7 = vweird.f32 %v1404_v7  ;;  %v446_v48 = vor.u32 1.1754944e-38, %v445_v25 }
 0x11e   :  { %v201_v45 = vpop.xlane.xlu1 %200  ;;  %v287_v49 = vmul.f32 %v1436_v36, %v1388_v58  ;;  %v1455_v50 = vmul.f32 0.007874016, %v185_v57  ;;  %v1458_v63 = vpop.eup %993  ;;  %v242_v44 = vsub.f32 1.5, %v241_v15  ;;  %v339_v20 = vmul.f32 %v1382_v55, %v338_v54 }
 0x11f   :  { %1001 = vrsqrt.f32 %v1450_v47  ;;  %v1462_v5 = vmul.f32 0.007874016, %v201_v45  ;;  %v1464_v17 = vpop.eup %995  ;;  %v299_v1 = vmul.f32 %v1458_v63, %v1395_v2  ;;  %v351_v32 = vmul.f32 %v1391_v29, %v350_v56 }
 0x120   :  { %v1468_v62 = vpop.eup %997  ;;  %1003 = vrsqrt.f32 %v1455_v50  ;;  %v288_v31 = vmul.f32 %v1436_v36, %v287_v49  ;;  %v395_v8 = vmul.f32 %v1464_v17, %v1402_v6  ;;  %v243_v33 = vmul.f32 %v1397_v4, %v242_v44 }
 0x121   :  { %1005 = vrsqrt.f32 %v1462_v5  ;;  %v435_v39 = vmul.f32 %v1468_v62, %v1404_v7  ;;  %v1490_v24 = vpop.eup %999  ;;  %v443_v15 = vand.u32 2147483647, %v1404_v7  ;;  %v300_v35 = vmul.f32 %v1458_v63, %v299_v1  ;;  %v1571_v7 = vld [vmem:[%s1914_s4] ss:$0 sm:$0xff] }
 0x122   :  { %v289_v29 = vmul.f32 0.5, %v288_v31  ;;  %v396_v4 = vmul.f32 %v1464_v17, %v395_v8  ;;  %v1512_v56 = vmul.f32 %v339_v20, %v1339_v11  ;;  %v547_v1 = vmul.f32 %v1490_v24, %v1425_v12 }
 0x123   :  { %v436_v44 = vsub.f32 1.0, %v435_v39  ;;  %vm551_vm8 = vweird.f32 %v1425_v12  ;;  %v1519_v25 = vmul.f32 %v351_v32, %v1345_v27  ;;  %v1522_v31 = vmul.f32 %v243_v33, %v1347_v14 }
 0x124   :  { %v209_v34 = vpop.xlane.xlu2 %208  ;;  %vm1527_vm9 = vcmp.eq.f32.partialorder %v443_v15, 8.507059e+37  ;;  %vm440_vm10 = vweird.f32 %v1468_v62  ;;  %v290_v32 = vsub.f32 1.5, %v289_v29  ;;  %v397_v33 = vmul.f32 0.5, %v396_v4 }
 0x125   :  { %v1497_v55 = vpop.eup %1001  ;;  %v1500_v57 = vmul.f32 0.007874016, %v209_v34  ;;  %v437_v49 = vmul.f32 %v1468_v62, %v436_v44  ;;  %v548_v59 = vsub.f32 1.0, %v547_v1  ;;  %vm552_vm12 = vweird.f32 %v1490_v24  ;;  %vm441_vm15 = vmor %vm439_vm7, %vm440_vm10 }
 0x126   :  { %v193_v45 = vpop.xlane.xlu1 %192  ;;  %v251_v0 = vmul.f32 %v1497_v55, %v1450_v47  ;;  %v1509_v16 = vpop.eup %1003  ;;  %v557_v26 = vand.u32 2147483648, %v1425_v12  ;;  %v282_v30 = vsel %vm281_vm5, %v1331_v61, %v280_v40  ;;  %v1922_v1 = vand.u32 2147483648, %v1331_v61  ;;  %vm553_vm1 = vmor %vm551_vm8, %vm552_vm12 }
 0x127   :  { %v1507_v54 = vmul.f32 0.007874016, %v193_v45  ;;  %1007 = vrsqrt.f32 %v1500_v57  ;;  %v263_v8 = vmul.f32 %v1509_v16, %v1455_v50  ;;  %v1006_v39 = vpop.eup %1005  ;;  %v301_v45 = vmul.f32 0.5, %v300_v35 }
 0x128   :  { %v252_v20 = vmul.f32 %v1497_v55, %v251_v0  ;;  %v359_v0 = vmul.f32 %v1006_v39, %v1462_v5  ;;  %v549_v44 = vmul.f32 %v1490_v24, %v548_v59  ;;  %vm245_vm14 = vcmp.eq.f32.partialorder %v1347_v14, inf }
 0x129   :  { %1009 = vrsqrt.f32 %v1507_v54  ;;  %v264_v3 = vmul.f32 %v1509_v16, %v263_v8  ;;  %v302_v4 = vsub.f32 1.5, %v301_v45  ;;  %v438_v8 = vadd.f32 %v1468_v62, %v437_v49 }
 0x12a   :  { %v253_v15 = vmul.f32 0.5, %v252_v20  ;;  %v360_v9 = vmul.f32 %v1006_v39, %v359_v0  ;;  %v291_v20 = vmul.f32 %v1436_v36, %v290_v32  ;;  %v398_v0 = vsub.f32 1.5, %v397_v33 }
 0x12b   :  { %v265_v35 = vmul.f32 0.5, %v264_v3  ;;  %v285_v3 = vsel %vm283_vm6, %v1922_v1, %v282_v30  ;;  %vm247_vm0 = vcmp.eq.f32.partialorder %v1347_v14, 0.0  ;;  %v442_v30 = vsel %vm441_vm15, %v1468_v62, %v438_v8 }
 0x12c   :  { %v361_v40 = vmul.f32 0.5, %v360_v9  ;;  %v254_v61 = vsub.f32 1.5, %v253_v15  ;;  %v550_v49 = vadd.f32 %v1490_v24, %v549_v44  ;;  %v1565_v36 = vadd.f32 1e-06, %v285_v3 }
 0x12d   :  { %v1544_v29 = vpop.eup %1007  ;;  %v266_v9 = vsub.f32 1.5, %v265_v35  ;;  %v558_v33 = vor.u32 1.1754944e-38, %v557_v26  ;;  %v447_v15 = vsel %vm1527_vm9, %v446_v48, %v442_v30  ;;  %vm341_vm2 = vcmp.eq.f32.partialorder %v1339_v11, inf }
 0x12e   :  { %v407_v23 = vmul.f32 %v1544_v29, %v1500_v57  ;;  %v362_v45 = vsub.f32 1.5, %v361_v40  ;;  %v554_v35 = vsel %vm553_vm1, %v1490_v24, %v550_v49  ;;  %1011 = vrcp.f32 %v1565_v36 }
 0x12f   :  { %v1561_v59 = vpop.eup %1009  ;;  %v678_v8 = vmul.f32 %v1378_v46, %v447_v15  ;;  %v1923_v44 = vand.u32 2147483647, %v1425_v12  ;;  %v378_v26 = vsel %vm377_vm11, %v1326_v53, %v1476_v38  ;;  %v1593_v48 = vmul.f32 %v291_v20, %v1388_v58 }
 0x130   :  { %v408_v32 = vmul.f32 %v1544_v29, %v407_v23  ;;  %v311_v62 = vmul.f32 %v1561_v59, %v1507_v54  ;;  %v303_v23 = vmul.f32 %v1458_v63, %v302_v4  ;;  %v399_v3 = vmul.f32 %v1464_v17, %v398_v0 }
 0x131   :  { %vm556_vm3 = vcmp.eq.f32.partialorder %v1923_v44, 8.507059e+37  ;;  %v255_v63 = vmul.f32 %v1497_v55, %v254_v61  ;;  %v698_v46 = vadd.f32 %v1571_v7, %v678_v8  ;;  %vm343_vm4 = vcmp.eq.f32.partialorder %v1339_v11, 0.0 }
 0x132   :  { %v409_v24 = vmul.f32 0.5, %v408_v32  ;;  %v312_v34 = vmul.f32 %v1561_v59, %v311_v62  ;;  %v559_v1 = vsel %vm556_vm3, %v558_v33, %v554_v35  ;;  %v267_v4 = vmul.f32 %v1509_v16, %v266_v9 }
 0x133   :  { %v686_v12 = vmul.f32 %v1371_v42, %v559_v1  ;;  %v363_v38 = vmul.f32 %v1006_v39, %v362_v45  ;;  %v320_v20 = vand.u32 2147483648, %v1507_v54  ;;  %v1924_v40 = vand.u32 2147483648, %v1326_v53  ;;  %778 = vmatmul.f32.vlgmr.msra.gmra.mxu0 %v698_v46 }
 0x134   :  { %v499_v55 = vand.u32 2147483647, %v1565_v36  ;;  %v246_v42 = vsel %vm245_vm14, %v1347_v14, %v1522_v31  ;;  %v1012_v16 = vpop.eup %1011  ;;  %v1616_v39 = vmul.f32 %v303_v23, %v1395_v2  ;;  %v410_v61 = vsub.f32 1.5, %v409_v24 }
 0x135   :  { %v381_v30 = vsel %vm379_vm13, %v1924_v40, %v378_v26  ;;  %v706_v17 = vadd.f32 %v1571_v7, %v686_v12  ;;  %v313_v49 = vmul.f32 0.5, %v312_v34  ;;  %v1925_v53 = vand.u32 2147483648, %v1347_v14 }
 0x136   :  { %v1609_v0 = vadd.f32 1e-06, %v381_v30  ;;  %v1623_v45 = vmul.f32 %v399_v3, %v1402_v6  ;;  %v1626_v32 = vmul.f32 %v255_v63, %v1450_v47  ;;  %v491_v31 = vmul.f32 %v1012_v16, %v1565_v36 }
 0x137   :  { %v249_v9 = vsel %vm247_vm0, %v1925_v53, %v246_v42  ;;  %802 = vmatmul.f32.vlgmr.msra.gmra.mxu2 %v706_v17  ;;  %v1631_v33 = vmul.f32 %v267_v4, %v1455_v50  ;;  %v1634_v62 = vmul.f32 %v363_v38, %v1462_v5  ;;  %vm495_vm5 = vweird.f32 %v1565_v36 }
 0x138   :  { %1013 = vrcp.f32 %v1609_v0  ;;  %v501_v14 = vand.u32 2147483648, %v1565_v36  ;;  %v492_v15 = vsub.f32 1.0, %v491_v31  ;;  %vm1638_vm6 = vcmp.eq.f32.partialorder %v499_v55, 8.507059e+37 }
 0x139   :  { %v1642_v23 = vadd.f32 1e-06, %v249_v9  ;;  %v342_v8 = vsel %vm341_vm2, %v1339_v11, %v1512_v56  ;;  %v411_v44 = vmul.f32 %v1544_v29, %v410_v61  ;;  %v314_v26 = vsub.f32 1.5, %v313_v49 }
 0x13a   :  { %v344_v24 = vand.u32 2147483648, %v1339_v11  ;;  %vm389_vm7 = vcmp.eq.f32.partialorder %v1329_v60, inf  ;;  %v493_v34 = vmul.f32 %v1012_v16, %v492_v15  ;;  %vm496_vm8 = vweird.f32 %v1012_v16 }
 0x13b   :  { %1015 = vrcp.f32 %v1642_v23  ;;  %v390_v1 = vsel %vm389_vm7, %v1329_v60, %v1483_v10  ;;  %v502_v3 = vor.u32 1.1754944e-38, %v501_v14  ;;  %v611_v63 = vand.u32 2147483647, %v1609_v0  ;;  %vm497_vm10 = vmor %vm495_vm5, %vm496_vm8 }
 0x13c   :  { %v345_v56 = vsel %vm343_vm4, %v344_v24, %v342_v8  ;;  %v392_v29 = vand.u32 2147483648, %v1329_v60  ;;  %v494_v12 = vadd.f32 %v1012_v16, %v493_v34  ;;  %v613_v4 = vand.u32 2147483648, %v1609_v0 }
 0x13d   :  { %v1659_v38 = vadd.f32 1e-06, %v345_v56  ;;  %vm391_vm9 = vcmp.eq.f32.partialorder %v1329_v60, 0.0  ;;  %v1663_v40 = vmul.f32 %v411_v44, %v1500_v57  ;;  %v457_v11 = vand.u32 2147483647, %v1642_v23 }
 0x13e   :  { %v1014_v46 = vpop.eup %1013  ;;  %v393_v30 = vsel %vm391_vm9, %v392_v29, %v390_v1  ;;  %v1670_v17 = vmul.f32 %v1561_v59, %v314_v26  ;;  %v498_v55 = vsel %vm497_vm10, %v1012_v16, %v494_v12  ;;  %vm607_vm11 = vweird.f32 %v1609_v0 }
 0x13f   :  { %v603_v10 = vmul.f32 %v1014_v46, %v1609_v0  ;;  %1017 = vrcp.f32 %v1659_v38  ;;  %v503_v60 = vsel %vm1638_vm6, %v502_v3, %v498_v55  ;;  %vm1676_vm12 = vcmp.eq.f32.partialorder %v611_v63, 8.507059e+37 }
 0x140   :  { %v1680_v61 = vadd.f32 1e-06, %v393_v30  ;;  %v682_v53 = vmul.f32 %v1415_v18, %v503_v60  ;;  %v614_v59 = vor.u32 1.1754944e-38, %v613_v4  ;;  %vm453_vm13 = vweird.f32 %v1642_v23 }
 0x141   :  { %v604_v42 = vsub.f32 1.0, %v603_v10  ;;  %v1016_v49 = vpop.eup %1015  ;;  %v459_v16 = vand.u32 2147483648, %v1642_v23  ;;  %vm608_vm14 = vweird.f32 %v1014_v46  ;;  %vm1686_vm15 = vcmp.eq.f32.partialorder %v457_v11, 8.507059e+37 }
 0x142   :  { %v449_v31 = vmul.f32 %v1016_v49, %v1642_v23  ;;  %v702_v15 = vadd.f32 %v1571_v7, %v682_v53  ;;  %v569_v35 = vand.u32 2147483647, %v1659_v38  ;;  %1019 = vrcp.f32 %v1680_v61  ;;  %vm609_vm1 = vmor %vm607_vm11, %vm608_vm14 }
 0x143   :  { %v605_v9 = vmul.f32 %v1014_v46, %v604_v42  ;;  %vm293_vm0 = vcmp.eq.f32.partialorder %v1388_v58, inf  ;;  %v571_v44 = vand.u32 2147483648, %v1659_v38  ;;  %vm454_vm2 = vweird.f32 %v1016_v49 }
 0x144   :  { %v450_v8 = vsub.f32 1.0, %v449_v31  ;;  %v294_v26 = vsel %vm293_vm0, %v1388_v58, %v1593_v48  ;;  %790 = vmatmul.f32.vlgmr.msra.gmra.mxu1 %v702_v15  ;;  %vm295_vm3 = vcmp.eq.f32.partialorder %v1388_v58, 0.0  ;;  %v296_v34 = vand.u32 2147483648, %v1388_v58  ;;  %vm455_vm6 = vmor %vm453_vm13, %vm454_vm2 }
 0x145   :  { %v606_v18 = vadd.f32 %v1014_v46, %v605_v9  ;;  %v1018_v24 = vpop.eup %1017  ;;  %vm353_vm4 = vcmp.eq.f32.partialorder %v1345_v27, inf  ;;  %vm355_vm5 = vcmp.eq.f32.partialorder %v1345_v27, 0.0  ;;  %v356_v29 = vand.u32 2147483648, %v1345_v27 }
 0x146   :  { %v451_v3 = vmul.f32 %v1016_v49, %v450_v8  ;;  %v561_v63 = vmul.f32 %v1018_v24, %v1659_v38  ;;  %v297_v56 = vsel %vm295_vm3, %v296_v34, %v294_v26  ;;  %v354_v0 = vsel %vm353_vm4, %v1345_v27, %v1519_v25 }
 0x147   :  { %v610_v1 = vsel %vm609_vm1, %v1014_v46, %v606_v18  ;;  %v1710_v10 = vadd.f32 1e-06, %v297_v56  ;;  %v460_v11 = vor.u32 1.1754944e-38, %v459_v16  ;;  %vm565_vm7 = vweird.f32 %v1659_v38 }
 0x148   :  { %v615_v48 = vsel %vm1676_vm12, %v614_v59, %v610_v1  ;;  %v452_v58 = vadd.f32 %v1016_v49, %v451_v3  ;;  %v562_v4 = vsub.f32 1.0, %v561_v63  ;;  %v1020_v46 = vpop.eup %1019  ;;  %vm566_vm8 = vweird.f32 %v1018_v24 }
 0x149   :  { %v690_v12 = vmul.f32 %v1408_v43, %v615_v48  ;;  %v357_v30 = vsel %vm355_vm5, %v356_v29, %v354_v0  ;;  %v617_v43 = vmul.f32 %v1020_v46, %v1680_v61  ;;  %vm1720_vm9 = vcmp.eq.f32.partialorder %v569_v35, 8.507059e+37  ;;  %vm567_vm10 = vmor %vm565_vm7, %vm566_vm8 }
 0x14a   :  { %v456_v55 = vsel %vm455_vm6, %v1016_v49, %v452_v58  ;;  %v563_v27 = vmul.f32 %v1018_v24, %v562_v4  ;;  %v572_v23 = vor.u32 1.1754944e-38, %v571_v44  ;;  %1021 = vrcp.f32 %v1710_v10 }
 0x14b   :  { %v710_v25 = vadd.f32 %v1571_v7, %v690_v12  ;;  %v461_v60 = vsel %vm1686_vm15, %v460_v11, %v456_v55  ;;  %v618_v59 = vsub.f32 1.0, %v617_v43  ;;  %v625_v49 = vand.u32 2147483647, %v1680_v61 }
 0x14c   :  { %v679_v36 = vmul.f32 %v1429_v13, %v461_v60  ;;  %v564_v53 = vadd.f32 %v1018_v24, %v563_v27  ;;  %vm622_vm11 = vweird.f32 %v1020_v46  ;;  %v627_v16 = vand.u32 2147483648, %v1680_v61 }
 0x14d   :  { %814 = vmatmul.f32.vlgmr.msra.gmra.mxu3 %v710_v25  ;;  %v1731_v9 = vadd.f32 1e-06, %v357_v30  ;;  %vm401_vm12 = vcmp.eq.f32.partialorder %v1402_v6, inf  ;;  %v619_v15 = vmul.f32 %v1020_v46, %v618_v59  ;;  %vm621_vm13 = vweird.f32 %v1680_v61 }
 0x14e   :  { %v699_v31 = vadd.f32 %v1571_v7, %v679_v36  ;;  %v568_v14 = vsel %vm567_vm10, %v1018_v24, %v564_v53  ;;  %v402_v13 = vsel %vm401_vm12, %v1402_v6, %v1623_v45  ;;  %v404_v38 = vand.u32 2147483648, %v1402_v6  ;;  %vm623_vm0 = vmor %vm621_vm13, %vm622_vm11 }
 0x14f   :  { %v573_v35 = vsel %vm1720_vm9, %v572_v23, %v568_v14  ;;  %1023 = vrcp.f32 %v1731_v9  ;;  %v620_v8 = vadd.f32 %v1020_v46, %v619_v15  ;;  %vm403_vm14 = vcmp.eq.f32.partialorder %v1402_v6, 0.0 }
 0x150   :  { %781 = vmatmul.f32.gmra.mxu0 %v699_v31  ;;  %v687_v18 = vmul.f32 %v1360_v22, %v573_v35  ;;  %vm257_vm15 = vcmp.eq.f32.partialorder %v1450_v47, inf  ;;  %v1022_v44 = vpop.eup %1021  ;;  %vm626_vm1 = vcmp.eq.f32.partialorder %v625_v49, 8.507059e+37  ;;  %v628_v45 = vor.u32 1.1754944e-38, %v627_v16 }
 0x151   :  { %v405_v26 = vsel %vm403_vm14, %v404_v38, %v402_v13  ;;  %v258_v61 = vsel %vm257_vm15, %v1450_v47, %v1626_v32  ;;  %v624_v34 = vsel %vm623_vm0, %v1020_v46, %v620_v8  ;;  %v505_v1 = vmul.f32 %v1022_v44, %v1710_v10 }
 0x152   :  { %v707_v24 = vadd.f32 %v1571_v7, %v687_v18  ;;  %v260_v22 = vand.u32 2147483648, %v1450_v47  ;;  %v629_v3 = vsel %vm626_vm1, %v628_v45, %v624_v34  ;;  %v513_v6 = vand.u32 2147483647, %v1710_v10 }
 0x153   :  { %v1752_v63 = vadd.f32 1e-06, %v405_v26  ;;  %vm259_vm2 = vcmp.eq.f32.partialorder %v1450_v47, 0.0  ;;  %v1757_v48 = vmul.f32 %v1670_v17, %v1507_v54  ;;  %v691_v32 = vmul.f32 %v1386_v28, %v629_v3 }
 0x154   :  { %805 = vmatmul.f32.gmra.mxu2 %v707_v24  ;;  %v506_v56 = vsub.f32 1.0, %v505_v1  ;;  %v261_v0 = vsel %vm259_vm2, %v260_v22, %v258_v61  ;;  %vm509_vm3 = vweird.f32 %v1710_v10  ;;  %vm510_vm4 = vweird.f32 %v1022_v44 }
 0x155   :  { %v1024_v29 = vpop.eup %1023  ;;  %v515_v12 = vand.u32 2147483648, %v1710_v10  ;;  %1025 = vrcp.f32 %v1752_v63  ;;  %v711_v58 = vadd.f32 %v1571_v7, %v691_v32  ;;  %vm305_vm5 = vcmp.eq.f32.partialorder %v1395_v2, inf  ;;  %vm511_vm8 = vmor %vm509_vm3, %vm510_vm4 }
 0x156   :  { %v507_v47 = vmul.f32 %v1022_v44, %v506_v56  ;;  %v575_v4 = vmul.f32 %v1024_v29, %v1731_v9  ;;  %vm1766_vm6 = vcmp.eq.f32.partialorder %v513_v6, 8.507059e+37  ;;  %v583_v28 = vand.u32 2147483647, %v1731_v9 }
 0x157   :  { %v1771_v46 = vadd.f32 1e-06, %v261_v0  ;;  %v306_v11 = vsel %vm305_vm5, %v1395_v2, %v1616_v39  ;;  %vm269_vm7 = vcmp.eq.f32.partialorder %v1455_v50, inf  ;;  %817 = vmatmul.f32.gmra.mxu3 %v711_v58  ;;  %v585_v55 = vand.u32 2147483648, %v1731_v9 }
 0x158   :  { %v508_v30 = vadd.f32 %v1022_v44, %v507_v47  ;;  %v576_v25 = vsub.f32 1.0, %v575_v4  ;;  %v308_v27 = vand.u32 2147483648, %v1395_v2  ;;  %v516_v43 = vor.u32 1.1754944e-38, %v515_v12 }
 0x159   :  { %v639_v60 = vand.u32 2147483647, %v1752_v63  ;;  %1027 = vrcp.f32 %v1771_v46  ;;  %vm307_vm9 = vcmp.eq.f32.partialorder %v1395_v2, 0.0  ;;  %vm580_vm10 = vweird.f32 %v1024_v29 }
 0x15a   :  { %v512_v39 = vsel %vm511_vm8, %v1022_v44, %v508_v30  ;;  %v577_v42 = vmul.f32 %v1024_v29, %v576_v25  ;;  %v309_v23 = vsel %vm307_vm9, %v308_v27, %v306_v11  ;;  %vm579_vm11 = vweird.f32 %v1731_v9 }
 0x15b   :  { %v1026_v36 = vpop.eup %1025  ;;  %v517_v53 = vsel %vm1766_vm6, %v516_v43, %v512_v39  ;;  %vm1787_vm12 = vcmp.eq.f32.partialorder %v583_v28, 8.507059e+37  ;;  %v1791_v59 = vadd.f32 1e-06, %v309_v23  ;;  %v586_v2 = vor.u32 1.1754944e-38, %v585_v55  ;;  %vm581_vm13 = vmor %vm579_vm11, %vm580_vm10 }
 0x15c   :  { %v683_v49 = vmul.f32 %v1434_v51, %v517_v53  ;;  %v578_v16 = vadd.f32 %v1024_v29, %v577_v42  ;;  %v631_v31 = vmul.f32 %v1026_v36, %v1752_v63  ;;  %vm635_vm14 = vweird.f32 %v1752_v63 }
 0x15d   :  { %vm1796_vm15 = vcmp.eq.f32.partialorder %v639_v60, 8.507059e+37  ;;  %v641_v9 = vand.u32 2147483648, %v1752_v63  ;;  %1029 = vrcp.f32 %v1791_v59  ;;  %vm317_vm0 = vcmp.eq.f32.partialorder %v1507_v54, inf }
 0x15e   :  { %v703_v15 = vadd.f32 %v1571_v7, %v683_v49  ;;  %v582_v51 = vsel %vm581_vm13, %v1024_v29, %v578_v16  ;;  %v632_v13 = vsub.f32 1.0, %v631_v31  ;;  %v471_v35 = vand.u32 2147483647, %v1771_v46 }
 0x15f   :  { %v1028_v38 = vpop.eup %1027  ;;  %v587_v18 = vsel %vm1787_vm12, %v586_v2, %v582_v51  ;;  %vm636_vm1 = vweird.f32 %v1026_v36  ;;  %v473_v8 = vand.u32 2147483648, %v1771_v46  ;;  %vm365_vm2 = vcmp.eq.f32.partialorder %v1462_v5, inf }
 0x160   :  { %vm413_vm3 = vcmp.eq.f32.partialorder %v1500_v57, inf  ;;  %793 = vmatmul.f32.gmra.mxu1 %v703_v15  ;;  %v688_v44 = vmul.f32 %v1419_v19, %v587_v18  ;;  %v633_v45 = vmul.f32 %v1026_v36, %v632_v13  ;;  %v463_v26 = vmul.f32 %v1028_v38, %v1771_v46  ;;  %vm637_vm6 = vmor %vm635_vm14, %vm636_vm1 }
 0x161   :  { %v366_v61 = vsel %vm365_vm2, %v1462_v5, %v1634_v62  ;;  %vm367_vm4 = vcmp.eq.f32.partialorder %v1462_v5, 0.0  ;;  %v368_v24 = vand.u32 2147483648, %v1462_v5  ;;  %v270_v34 = vsel %vm269_vm7, %v1455_v50, %v1631_v33 }
 0x162   :  { %vm271_vm5 = vcmp.eq.f32.partialorder %v1455_v50, 0.0  ;;  %v708_v1 = vadd.f32 %v1571_v7, %v688_v44  ;;  %v634_v19 = vadd.f32 %v1026_v36, %v633_v45  ;;  %v464_v22 = vsub.f32 1.0, %v463_v26 }
 0x163   :  { %v1940_v3 = vand.u32 2147483648, %v1455_v50  ;;  %v1030_v32 = vpop.eup %1029  ;;  %v642_v5 = vor.u32 1.1754944e-38, %v641_v9  ;;  %vm467_vm8 = vweird.f32 %v1771_v46  ;;  %v369_v62 = vsel %vm367_vm4, %v368_v24, %v366_v61 }
 0x164   :  { %808 = vmatmul.f32.gmra.mxu2 %v708_v1  ;;  %v638_v33 = vsel %vm637_vm6, %v1026_v36, %v634_v19  ;;  %v465_v0 = vmul.f32 %v1028_v38, %v464_v22  ;;  %vm468_vm7 = vweird.f32 %v1028_v38  ;;  %v519_v29 = vmul.f32 %v1030_v32, %v1791_v59 }
 0x165   :  { %v273_v6 = vsel %vm271_vm5, %v1940_v3, %v270_v34  ;;  %v643_v50 = vsel %vm1796_vm15, %v642_v5, %v638_v33  ;;  %vm1833_vm9 = vcmp.eq.f32.partialorder %v471_v35, 8.507059e+37  ;;  %v1837_v63 = vadd.f32 1e-06, %v369_v62  ;;  %vm469_vm10 = vmor %vm467_vm8, %vm468_vm7 }
 0x166   :  { %v1828_v56 = vadd.f32 1e-06, %v273_v6  ;;  %v692_v58 = vmul.f32 %v1444_v52, %v643_v50  ;;  %v466_v47 = vadd.f32 %v1028_v38, %v465_v0  ;;  %v474_v4 = vor.u32 1.1754944e-38, %v473_v8 }
 0x167   :  { %v520_v17 = vsub.f32 1.0, %v519_v29  ;;  %v527_v28 = vand.u32 2147483647, %v1791_v59  ;;  %v529_v11 = vand.u32 2147483648, %v1791_v59  ;;  %v318_v30 = vsel %vm317_vm0, %v1507_v54, %v1757_v48 }
 0x168   :  { %1031 = vrcp.f32 %v1828_v56  ;;  %v712_v25 = vadd.f32 %v1571_v7, %v692_v58  ;;  %v470_v52 = vsel %vm469_vm10, %v1028_v38, %v466_v47  ;;  %vm524_vm11 = vweird.f32 %v1030_v32 }
 0x169   :  { %1033 = vrcp.f32 %v1837_v63  ;;  %v521_v55 = vmul.f32 %v1030_v32, %v520_v17  ;;  %v416_v27 = vand.u32 2147483648, %v1500_v57  ;;  %v475_v46 = vsel %vm1833_vm9, %v474_v4, %v470_v52  ;;  %v1944_v17 = vld [vmem:[#allocation15_spill] sm:$0xff] }
 0x16a   :  { %vm319_vm12 = vcmp.eq.f32.partialorder %v1507_v54, 0.0  ;;  %v414_v43 = vsel %vm413_vm3, %v1500_v57, %v1663_v40  ;;  %820 = vmatmul.f32.gmra.mxu3 %v712_v25  ;;  %v680_v48 = vmul.f32 %v1448_v41, %v475_v46  ;;  %vm523_vm13 = vweird.f32 %v1791_v59 }
 0x16b   :  { %v522_v60 = vadd.f32 %v1030_v32, %v521_v55  ;;  %v321_v39 = vsel %vm319_vm12, %v320_v20, %v318_v30  ;;  %vm525_vm14 = vmor %vm523_vm13, %vm524_vm11  ;;  %vm528_vm15 = vcmp.eq.f32.partialorder %v527_v28, 8.507059e+37  ;;  %v530_v23 = vor.u32 1.1754944e-38, %v529_v11 }
 0x16c   :  { %v425_v36 = vadd.f32 1e-06, %v321_v39  ;;  %vm415_vm0 = vcmp.eq.f32.partialorder %v1500_v57, 0.0  ;;  %v700_v53 = vadd.f32 %v1571_v7, %v680_v48  ;;  %v485_v2 = vand.u32 2147483647, %v1828_v56  ;;  %v827_v48 = vld [vmem:[#allocation8] sm:$0xff] }
 0x16d   :  { %v526_v10 = vsel %vm525_vm14, %v1030_v32, %v522_v60  ;;  %v417_v49 = vsel %vm415_vm0, %v416_v27, %v414_v43  ;;  %v487_v31 = vand.u32 2147483648, %v1828_v56  ;;  %v599_v51 = vand.u32 2147483648, %v1837_v63  ;;  %v1943_v32 = vld [vmem:[#allocation13_spill] sm:$0xff]  ;;  %v1945_v27 = vld [vmem:[#allocation14_spill] sm:$0xff] }
 0x16e   :  { %v1032_v42 = vpop.eup %1031  ;;  %v531_v16 = vsel %vm528_vm15, %v530_v23, %v526_v10  ;;  %1035 = vrcp.f32 %v425_v36  ;;  %784 = vmatmul.f32.gmra.mxu0 %v700_v53  ;;  %v433_v57 = vadd.f32 1e-06, %v417_v49  ;;  %vm481_vm2 = vweird.f32 %v1828_v56  ;;  %v1886_v60 = vld [vmem:[%s1912_s2] ss:$0 sm:$0xff]  ;;  %s1147_s2 = smov [#allocation9]  }
 0x16f   :  { %v477_v40 = vmul.f32 %v1032_v42, %v1828_v56  ;;  %v1034_v41 = vpop.eup %1033  ;;  %v684_v54 = vmul.f32 %v1440_v37, %v531_v16  ;;  %vm482_vm1 = vweird.f32 %v1032_v42  ;;  %v597_v13 = vand.u32 2147483647, %v1837_v63  ;;  %v831_v49 = vld [vmem:[#allocation8 + $0x20] sm:$0xff]  ;;  %s899_s15 = sshll.u32 %s1147_s2, 4  ;;  %s900_s15 = int_to_ptr.vmem [resolvable:$true] %s899_s15 }
 0x170   :  { %v589_v20 = vmul.f32 %v1034_v41, %v1837_v63  ;;  %1037 = vrcp.f32 %v433_v57  ;;  %vm594_vm3 = vweird.f32 %v1034_v41  ;;  %vm593_vm4 = vweird.f32 %v1837_v63  ;;  %vm483_vm5 = vmor %vm481_vm2, %vm482_vm1 }
 0x171   :  { %v478_v59 = vsub.f32 1.0, %v477_v40  ;;  %v704_v14 = vadd.f32 %v1571_v7, %v684_v54  ;;  %v488_v18 = vor.u32 1.1754944e-38, %v487_v31  ;;  %vm486_vm6 = vcmp.eq.f32.partialorder %v485_v2, 8.507059e+37  ;;  %vm595_vm8 = vmor %vm593_vm4, %vm594_vm3  ;;  %v828_v54 = vld [vmem:[#allocation8 + $0x8] sm:$0xff] }
 0x172   :  { %v590_v9 = vsub.f32 1.0, %v589_v20  ;;  %v600_v26 = vor.u32 1.1754944e-38, %v599_v51  ;;  %vm598_vm7 = vcmp.eq.f32.partialorder %v597_v13, 8.507059e+37  ;;  %v541_v3 = vand.u32 2147483647, %v425_v36  ;;  %v839_v20 = vld [vmem:[#allocation8 + $0x60] sm:$0xff] }
 0x173   :  { %v479_v15 = vmul.f32 %v1032_v42, %v478_v59  ;;  %796 = vmatmul.f32.gmra.mxu1 %v704_v14  ;;  %v543_v6 = vand.u32 2147483648, %v425_v36  ;;  %vm537_vm10 = vweird.f32 %v425_v36  ;;  %v655_v12 = vand.u32 2147483648, %v433_v57  ;;  %v840_v13 = vld [vmem:[#allocation8 + $0x68] sm:$0xff] }
 0x174   :  { %v591_v37 = vmul.f32 %v1034_v41, %v590_v9  ;;  %v1036_v38 = vpop.eup %1035  ;;  %vm542_vm12 = vcmp.eq.f32.partialorder %v541_v3, 8.507059e+37  ;;  %v653_v47 = vand.u32 2147483647, %v433_v57  ;;  %vm649_vm14 = vweird.f32 %v433_v57  ;;  %v841_v3 = vld [vmem:[#allocation8 + $0x70] sm:$0xff] }
 0x175   :  { %v480_v35 = vadd.f32 %v1032_v42, %v479_v15  ;;  %v533_v45 = vmul.f32 %v1036_v38, %v425_v36  ;;  %vm538_vm9 = vweird.f32 %v1036_v38  ;;  %v656_v30 = vor.u32 1.1754944e-38, %v655_v12  ;;  %v835_v36 = vld [vmem:[#allocation8 + $0x40] sm:$0xff]  ;;  %v836_v15 = vld [vmem:[#allocation8 + $0x48] sm:$0xff]  ;;  %v830_v12 = vld [vmem:[#allocation8 + $0x18] sm:$0xff] }
 0x176   :  { %v592_v8 = vadd.f32 %v1034_v41, %v591_v37  ;;  %v1038_v19 = vpop.eup %1037  ;;  %vm539_vm11 = vmor %vm537_vm10, %vm538_vm9  ;;  %vm654_vm0 = vcmp.eq.f32.partialorder %v653_v47, 8.507059e+37 }
 0x177   :  { %v484_v44 = vsel %vm483_vm5, %v1032_v42, %v480_v35  ;;  %v534_v1 = vsub.f32 1.0, %v533_v45  ;;  %v645_v33 = vmul.f32 %v1038_v19, %v433_v57  ;;  %vm650_vm13 = vweird.f32 %v1038_v19 }
 0x178   :  { %v489_v61 = vsel %vm486_vm6, %v488_v18, %v484_v44  ;;  %v596_v24 = vsel %vm595_vm8, %v1034_v41, %v592_v8  ;;  %vm651_vm15 = vmor %vm649_vm14, %vm650_vm13  ;;  %v832_v18 = vld [vmem:[#allocation8 + $0x28] sm:$0xff] }
 0x179   :  { %v681_v34 = vmul.f32 %v1307_v21, %v489_v61  ;;  %v601_v22 = vsel %vm598_vm7, %v600_v26, %v596_v24  ;;  %v535_v56 = vmul.f32 %v1036_v38, %v534_v1  ;;  %v646_v50 = vsub.f32 1.0, %v645_v33  ;;  %v837_v24 = vld [vmem:[#allocation8 + $0x50] sm:$0xff] }
 0x17a   :  { %v689_v5 = vmul.f32 %v1943_v32, %v601_v22  ;;  %v544_v21 = vor.u32 1.1754944e-38, %v543_v6 }
 0x17b   :  { %v701_v62 = vadd.f32 %v1571_v7, %v681_v34  ;;  %v536_v29 = vadd.f32 %v1036_v38, %v535_v56  ;;  %v647_v58 = vmul.f32 %v1038_v19, %v646_v50 }
 0x17c   :  { %v709_v0 = vadd.f32 %v1571_v7, %v689_v5 }
 0x17d   :  { %787 = vmatmul.f32.gmra.mxu0 %v701_v62  ;;  %v540_v63 = vsel %vm539_vm11, %v1036_v38, %v536_v29  ;;  %v648_v11 = vadd.f32 %v1038_v19, %v647_v58  ;;  %v833_v62 = vld [vmem:[#allocation8 + $0x30] sm:$0xff] }
 0x17e   :  { %811 = vmatmul.f32.gmra.mxu2 %v709_v0  ;;  %v545_v4 = vsel %vm542_vm12, %v544_v21, %v540_v63 }
 0x17f   :  { %v685_v28 = vmul.f32 %v1944_v17, %v545_v4  ;;  %v652_v52 = vsel %vm651_vm15, %v1038_v19, %v648_v11  ;;  %v829_v19 = vld [vmem:[#allocation8 + $0x10] sm:$0xff]  ;;  %v838_v4 = vld [vmem:[#allocation8 + $0x58] sm:$0xff] }
 0x180   :  { %v657_v55 = vsel %vm654_vm0, %v656_v30, %v652_v52  ;;  %v834_v17 = vld [vmem:[#allocation8 + $0x38] sm:$0xff] }
 0x181   :  { %v705_v25 = vadd.f32 %v1571_v7, %v685_v28  ;;  %v693_v46 = vmul.f32 %v1945_v27, %v657_v55  ;;  %v842_v27 = vld [vmem:[#allocation8 + $0x78] sm:$0xff] }
 0x183   :  { %799 = vmatmul.f32.gmra.mxu1 %v705_v25  ;;  %v713_v43 = vadd.f32 %v1571_v7, %v693_v46 }
 0x185   :  { %823 = vmatmul.f32.gmra.mxu3 %v713_v43 }
 0x1b0   :  { %v779_v39 = vpop.f32.mrf.mxu0 }
 0x1b1   :  { %v843_v42 = vadd.f32 %v827_v48, %v779_v39 }
 0x1b3   :  { %v863_v23 = vadd.f32 %v1886_v60, %v843_v42 }
 0x1b5   :  { %879 = vst [vmem:[#allocation9] sm:$0xff] %v863_v23 }
 0x1ba   :  { %v803_v53 = vpop.f32.mrf.mxu2 }
 0x1bb   :  { %v851_v10 = vadd.f32 %v835_v36, %v803_v53 }
 0x1bd   :  { %v871_v40 = vadd.f32 %v1886_v60, %v851_v10 }
 0x1bf   :  { %887 = vst [vmem:[#allocation9 + $0x40] sm:$0xff] %v871_v40 }
 0x1c1   :  { %v791_v7 = vpop.f32.mrf.mxu1 }
 0x1c2   :  { %v847_v41 = vadd.f32 %v831_v49, %v791_v7 }
 0x1c4   :  { %v867_v16 = vadd.f32 %v1886_v60, %v847_v41 }
 0x1c6   :  { %883 = vst [vmem:[#allocation9 + $0x20] sm:$0xff] %v867_v16 }
 0x1cd   :  { %v782_v59 = vpop.f32.mrf.mxu0 }
 0x1ce   :  { %v844_v2 = vadd.f32 %v828_v54, %v782_v59 }
 0x1d0   :  { %v815_v31 = vpop.f32.mrf.mxu3  ;;  %v864_v14 = vadd.f32 %v1886_v60, %v844_v2 }
 0x1d1   :  { %v855_v57 = vadd.f32 %v839_v20, %v815_v31 }
 0x1d2   :  { %880 = vst [vmem:[#allocation9 + $0x8] sm:$0xff] %v864_v14 }
 0x1d3   :  { %v875_v9 = vadd.f32 %v1886_v60, %v855_v57 }
 0x1d5   :  { %891 = vst [vmem:[#allocation9 + $0x60] sm:$0xff] %v875_v9 }
 0x1d7   :  { %v806_v51 = vpop.f32.mrf.mxu2 }
 0x1d8   :  { %v852_v37 = vadd.f32 %v836_v15, %v806_v51 }
 0x1da   :  { %v872_v35 = vadd.f32 %v1886_v60, %v852_v37  ;;  %v818_v38 = vpop.f32.mrf.mxu3 }
 0x1db   :  { %v856_v8 = vadd.f32 %v840_v13, %v818_v38 }
 0x1dc   :  { %888 = vst [vmem:[#allocation9 + $0x48] sm:$0xff] %v872_v35 }
 0x1dd   :  { %v794_v44 = vpop.f32.mrf.mxu1  ;;  %v876_v45 = vadd.f32 %v1886_v60, %v856_v8 }
 0x1de   :  { %v848_v26 = vadd.f32 %v832_v18, %v794_v44 }
 0x1df   :  { %892 = vst [vmem:[#allocation9 + $0x68] sm:$0xff] %v876_v45 }
 0x1e0   :  { %v868_v61 = vadd.f32 %v1886_v60, %v848_v26 }
 0x1e2   :  { %884 = vst [vmem:[#allocation9 + $0x28] sm:$0xff] %v868_v61 }
 0x1e7   :  { %v809_v34 = vpop.f32.mrf.mxu2 }
 0x1e8   :  { %v853_v1 = vadd.f32 %v837_v24, %v809_v34 }
 0x1ea   :  { %v873_v22 = vadd.f32 %v1886_v60, %v853_v1 }
 0x1eb   :  { %v785_v6 = vpop.f32.mrf.mxu0 }
 0x1ec   :  { %889 = vst [vmem:[#allocation9 + $0x50] sm:$0xff] %v873_v22  ;;  %v845_v32 = vadd.f32 %v829_v19, %v785_v6 }
 0x1ed   :  { %v821_v5 = vpop.f32.mrf.mxu3 }
 0x1ee   :  { %v857_v56 = vadd.f32 %v841_v3, %v821_v5  ;;  %v865_v33 = vadd.f32 %v1886_v60, %v845_v32 }
 0x1f0   :  { %v797_v0 = vpop.f32.mrf.mxu1  ;;  %v877_v29 = vadd.f32 %v1886_v60, %v857_v56  ;;  %881 = vst [vmem:[#allocation9 + $0x10] sm:$0xff] %v865_v33 }
 0x1f1   :  { %v849_v50 = vadd.f32 %v833_v62, %v797_v0 }
 0x1f2   :  { %893 = vst [vmem:[#allocation9 + $0x70] sm:$0xff] %v877_v29 }
 0x1f3   :  { %v869_v21 = vadd.f32 %v1886_v60, %v849_v50 }
 0x1f5   :  { %885 = vst [vmem:[#allocation9 + $0x30] sm:$0xff] %v869_v21 }
 0x1fa   :  { %v788_v63 = vpop.f32.mrf.mxu0 }
 0x1fb   :  { %v846_v58 = vadd.f32 %v830_v12, %v788_v63 }
 0x1fd   :  { %v866_v47 = vadd.f32 %v1886_v60, %v846_v58 }
 0x1ff   :  { %882 = vst [vmem:[#allocation9 + $0x18] sm:$0xff] %v866_v47 }
 0x200   :  { %v800_v11 = vpop.f32.mrf.mxu1 }
 0x201   :  { %v812_v28 = vpop.f32.mrf.mxu2  ;;  %v850_v25 = vadd.f32 %v834_v17, %v800_v11 }
 0x202   :  { %v854_v30 = vadd.f32 %v838_v4, %v812_v28 }
 0x203   :  { %v870_v55 = vadd.f32 %v1886_v60, %v850_v25 }
 0x204   :  { %v874_v52 = vadd.f32 %v1886_v60, %v854_v30 }
 0x205   :  { %886 = vst [vmem:[#allocation9 + $0x38] sm:$0xff] %v870_v55 }
 0x206   :  { %890 = vst [vmem:[#allocation9 + $0x58] sm:$0xff] %v874_v52 }
 0x208   :  { %v824_v46 = vpop.f32.mrf.mxu3 }
 0x209   :  { %v858_v43 = vadd.f32 %v842_v27, %v824_v46 }
 0x20b   :  { %v878_v48 = vadd.f32 %v1886_v60, %v858_v43 }
 0x20d   :  { %894 = vst [vmem:[#allocation9 + $0x78] sm:$0xff] %v878_v48 }
 0x20e   :  { %907 = dma.vmem_to_hbm [thread:$0]  %s900_s15, 2048, %s902_s18, [#allocation5], %s1142_s29, %s1142_s29, %s1143_s30  }
 0x20f   :  { %1139 = dma.done.wait [#allocation5], 2048  }
 0x210   :  { %1140 = vsyncadd [#allocation5], 4294965248 }
 0x211   :  { %912 = vsyncpa [#allocation4], 1 }
 0x212   :  { %913 = vsyncpa [#allocation7], 1 }
 0x213   :  { %914 = vsyncpa [#allocation5], 1 }

</bundles_post_ra>
